<compile_context>
chip_gen: v6e
topology: v6e:2x2x1
jax: 0.10.0
libtpu: 0.0.40
codegen_flags: <defaults>
</compile_context>

<pallas_src>
import functools

import jax
import jax.numpy as jnp
from jax.experimental import pallas as pl
from jax.experimental.pallas import tpu as pltpu


def _focal_weight(one_minus_pt, gamma):
    """(1-pt)^gamma; integer gamma specializes to VPU multiplies (no EUP pow)."""
    g = float(gamma)
    if g == int(g) and 0 <= int(g) <= 8:
        n = int(g)
        if n == 0:
            return jnp.ones_like(one_minus_pt)
        out = one_minus_pt
        for _ in range(n - 1):
            out = out * one_minus_pt
        return out
    return jnp.power(one_minus_pt, g)


def _focal_kernel(x_ref, t_ref, alpha_ref, out_ref, *, gamma, s_total):
    s_blk = pl.program_id(1)
    c = x_ref.shape[1]
    tile_s = x_ref.shape[2]

    x = x_ref[0].astype(jnp.float32)            # (C, TS) logits, f32 compute
    t = t_ref[0]                                # (1, TS) int32 class ids

    # Mask lanes past the true spatial extent (padded / overhanging last tile).
    lane = jax.lax.broadcasted_iota(jnp.int32, (1, tile_s), 1)
    valid = (s_blk * tile_s + lane) < s_total   # (1, TS) bool
    x = jnp.where(valid, x, 0.0)                # keep exp() finite on pad lanes

    # log-softmax over the class (sublane) axis.
    m = jnp.max(x, axis=0, keepdims=True)                           # (1, TS)
    lse = jnp.log(jnp.sum(jnp.exp(x - m), axis=0, keepdims=True))   # (1, TS)

    cls = jax.lax.broadcasted_iota(jnp.int32, (c, tile_s), 0)
    one_hot = (cls == t).astype(jnp.float32)                        # (C, TS)
    # TODO(synk): smooth=None default; label-smoothing clamp not applied here.

    x_t = jnp.sum(one_hot * x, axis=0, keepdims=True)    # target logit
    logpt0 = x_t - m - lse                               # log softmax @ target
    pt = jnp.exp(logpt0) + 1e-10                         # reference epsilon
    logpt = jnp.log(pt)
    focal = -_focal_weight(1.0 - pt, gamma) * logpt      # (1, TS)

    # alpha[target] via one-hot (alpha_ref is (C, 1), broadcast along lanes).
    alpha_row = jnp.sum(one_hot * alpha_ref[...], axis=0, keepdims=True)

    focal = jnp.where(valid, focal, 0.0)
    alpha_row = jnp.where(valid, alpha_row, 0.0)

    focal_sum = jnp.sum(focal)
    alpha_sum = jnp.sum(alpha_row)

    # Per-tile partials: sublane 0 = sum(focal), sublane 1 = sum(alpha[target]).
    which = jax.lax.broadcasted_iota(jnp.int32, (2, 128), 0)
    vals = jnp.where(which == 0, focal_sum, alpha_sum)   # (2, 128)
    out_ref[...] = vals.reshape(1, 1, 2, 128)


def focal_loss(x, target, *, num_class, alpha=None, gamma=2.0,
               size_average=True, tile_s=None):
    """x: (N, C, H, W) float logits (NCHW). target: (N, H, W) int class ids."""
    N, C, H, W = x.shape
    assert C == num_class
    S = H * W
    M = N * S

    if alpha is None:
        alpha_col = jnp.ones((num_class, 1), dtype=jnp.float32)
    else:
        # Matches the PyTorch module: provided alpha is normalized to sum 1.
        alpha_col = jnp.asarray(alpha, dtype=jnp.float32).reshape(num_class, 1)
        alpha_col = alpha_col / jnp.sum(alpha_col)

    # No transpose: keep C on sublanes, spatial (H*W) lane-dense.
    x3 = x.reshape(N, C, S)
    t3 = target.reshape(N, 1, S).astype(jnp.int32)

    # Lane axis of the tile must be a multiple of 128; pad minimally if needed
    # (padded lanes are masked out inside the kernel).
    if S % 128 != 0:
        s_pad = ((S + 127) // 128) * 128
        x3 = jnp.pad(x3, ((0, 0), (0, 0), (0, s_pad - S)))
        t3 = jnp.pad(t3, ((0, 0), (0, 0), (0, s_pad - S)))
    else:
        s_pad = S

    # Tile sizing: ~8 MiB of input per grid step. Double-buffered by the
    # pipeline (~16 MiB resident) this stays under the 32 MiB scoped-VMEM
    # limit requested below and well under v7x's 64 MiB physical VMEM.
    if tile_s is None:
        tile_bytes_target = 8 * 1024 * 1024
        lane_bytes = C * jnp.dtype(x.dtype).itemsize + 4  # logits col + i32 tgt
        tile_s = tile_bytes_target // lane_bytes
    tile_s = int(min(int(tile_s), s_pad))
    tile_s = max(128, (tile_s // 128) * 128)
    num_tiles = int(pl.cdiv(s_pad, tile_s))

    kernel = functools.partial(_focal_kernel, gamma=float(gamma), s_total=S)

    cost = pl.CostEstimate(
        flops=int(10 * M * C),
        transcendentals=int((C + 3) * M),
        bytes_accessed=int(x3.size * x3.dtype.itemsize + t3.size * 4
                           + N * num_tiles * 2 * 128 * 4),
    )

    partials = pl.pallas_call(
        kernel,
        out_shape=jax.ShapeDtypeStruct((N, num_tiles, 2, 128), jnp.float32),
        grid_spec=pltpu.PrefetchScalarGridSpec(
            num_scalar_prefetch=0,
            grid=(N, num_tiles),
            in_specs=[
                pl.BlockSpec((1, C, tile_s), lambda n, s: (n, 0, s)),  # logits
                pl.BlockSpec((1, 1, tile_s), lambda n, s: (n, 0, s)),  # targets
                pl.BlockSpec((C, 1), lambda n, s: (0, 0)),             # alpha
            ],
            out_specs=pl.BlockSpec((1, 1, 2, 128), lambda n, s: (n, s, 0, 0)),
        ),
        compiler_params=pltpu.CompilerParams(
            dimension_semantics=("parallel", "parallel"),
            vmem_limit_bytes=32 * 1024 * 1024),
        cost_estimate=cost,
    )(x3, t3, alpha_col)

    focal_total = jnp.sum(partials[:, :, 0, 0])
    alpha_total = jnp.sum(partials[:, :, 1, 0])

    if size_average:
        # mean over the (M, 1, M) broadcast of alpha[target] x focal terms.
        return (alpha_total / M) * (focal_total / M)
    # .sum() over the same broadcast (reference quirk).
    return alpha_total * focal_total


def _reference(x, target, gamma=2.0):
    """Pure-JAX reference mirroring the PyTorch code (incl. broadcast quirk)."""
    N, C, H, W = x.shape
    logit = jax.nn.softmax(x, axis=1)
    logit = jnp.transpose(logit.reshape(N, C, H * W), (0, 2, 1)).reshape(-1, C)
    t = target.reshape(-1)
    one_hot = jax.nn.one_hot(t, C, dtype=jnp.float32)
    pt = jnp.sum(one_hot * logit, axis=1) + 1e-10
    logpt = jnp.log(pt)
    alpha = jnp.ones((C,), jnp.float32)[t]
    focal = -jnp.power(1.0 - pt, gamma) * logpt
    return jnp.mean(alpha) * jnp.mean(focal)


if __name__ == "__main__":
    key = jax.random.PRNGKey(0)
    kx, kt = jax.random.split(key)

    N, C, H, W = 2, 4, 16, 16
    x = jax.random.normal(kx, (N, C, H, W), dtype=jnp.float32)
    target = jax.random.randint(kt, (N, H, W), 0, C, dtype=jnp.int32)

    loss = focal_loss(x, target, num_class=C, gamma=2.0, size_average=True)
    loss = jax.block_until_ready(loss)

    ref = _reference(x, target, gamma=2.0)
    assert jnp.allclose(loss, ref, atol=1e-5, rtol=1e-5), (loss, ref)

    print("KERNEL_OK")
</pallas_src>

<mosaic_0001>
module attributes {stable_mosaic.version = 11 : i64} {
  func.func @_focal_kernel(%arg0: i32, %arg1: i32, %arg2: memref<1x4x256xf32, #tpu.memory_space<vmem>>, %arg3: memref<1x1x256xi32, #tpu.memory_space<vmem>>, %arg4: memref<4x1xf32, #tpu.memory_space<vmem>>, %arg5: memref<1x1x2x128xf32, #tpu.memory_space<vmem>>) attributes {dimension_semantics = [#tpu.dimension_semantics<parallel>, #tpu.dimension_semantics<parallel>], iteration_bounds = array<i64: 2, 1>, scalar_prefetch = 0 : i64, scratch_operands = 0 : i64, tpu.core_type = #tpu.core_type<tc>, window_params = [{transform_indices = @transform_0, window_bounds = array<i64: 1, 4, 256>}, {transform_indices = @transform_1, window_bounds = array<i64: 1, 1, 256>}, {pipeline_mode = #tpu.pipeline_mode<synchronous>, transform_indices = @transform_2, window_bounds = array<i64: 4, 1>}, {transform_indices = @transform_3, window_bounds = array<i64: 1, 1, 2, 128>}]} {
    %c0 = arith.constant 0 : index
    %c0_0 = arith.constant 0 : index
    %c0_1 = arith.constant 0 : index
    %0 = vector.load %arg2[%c0, %c0_0, %c0_1] : memref<1x4x256xf32, #tpu.memory_space<vmem>>, vector<1x4x256xf32>
    %1 = vector.shape_cast %0 : vector<1x4x256xf32> to vector<4x256xf32>
    %c0_2 = arith.constant 0 : index
    %c0_3 = arith.constant 0 : index
    %c0_4 = arith.constant 0 : index
    %2 = vector.load %arg3[%c0_2, %c0_3, %c0_4] : memref<1x1x256xi32, #tpu.memory_space<vmem>>, vector<1x1x256xi32>
    %3 = vector.shape_cast %2 : vector<1x1x256xi32> to vector<1x256xi32>
    %4 = tpu.iota {dimensions = array<i32: 1>} : vector<1x256xi32>
    %c256_i32 = arith.constant 256 : i32
    %5 = arith.muli %arg1, %c256_i32 : i32
    %6 = vector.broadcast %5 : i32 to vector<1x256xi32>
    %7 = arith.addi %6, %4 : vector<1x256xi32>
    %c256_i32_5 = arith.constant 256 : i32
    %8 = vector.broadcast %c256_i32_5 : i32 to vector<1x256xi32>
    %9 = arith.cmpi slt, %7, %8 : vector<1x256xi32>
    %cst = arith.constant 0.000000e+00 : f32
    %10 = vector.shape_cast %9 : vector<1x256xi1> to vector<1x256xi1>
    %11 = vector.broadcast %10 : vector<1x256xi1> to vector<4x256xi1>
    %12 = vector.broadcast %cst : f32 to vector<4x256xf32>
    %13 = arith.select %11, %1, %12 : vector<4x256xi1>, vector<4x256xf32>
    %cst_6 = arith.constant dense<0xFF800000> : vector<256xf32>
    %14 = vector.multi_reduction <maximumf>, %13, %cst_6 [0] : vector<4x256xf32> to vector<256xf32>
    %15 = vector.shape_cast %14 : vector<256xf32> to vector<1x256xf32>
    %16 = vector.broadcast %15 : vector<1x256xf32> to vector<4x256xf32>
    %17 = arith.subf %13, %16 : vector<4x256xf32>
    %18 = math.exp %17 : vector<4x256xf32>
    %cst_7 = arith.constant dense<0.000000e+00> : vector<256xf32>
    %19 = vector.multi_reduction <add>, %18, %cst_7 [0] : vector<4x256xf32> to vector<256xf32>
    %20 = vector.shape_cast %19 : vector<256xf32> to vector<1x256xf32>
    %21 = math.log %20 : vector<1x256xf32>
    %22 = tpu.iota {dimensions = array<i32: 0>} : vector<4x256xi32>
    %23 = vector.broadcast %3 : vector<1x256xi32> to vector<4x256xi32>
    %24 = arith.cmpi eq, %22, %23 : vector<4x256xi32>
    %25 = arith.extui %24 : vector<4x256xi1> to vector<4x256xi32>
    %26 = arith.sitofp %25 : vector<4x256xi32> to vector<4x256xf32>
    %27 = arith.mulf %26, %13 : vector<4x256xf32>
    %cst_8 = arith.constant dense<0.000000e+00> : vector<256xf32>
    %28 = vector.multi_reduction <add>, %27, %cst_8 [0] : vector<4x256xf32> to vector<256xf32>
    %29 = vector.shape_cast %28 : vector<256xf32> to vector<1x256xf32>
    %30 = arith.subf %29, %15 : vector<1x256xf32>
    %31 = arith.subf %30, %21 : vector<1x256xf32>
    %32 = math.exp %31 : vector<1x256xf32>
    %cst_9 = arith.constant 1.000000e-10 : f32
    %33 = vector.broadcast %cst_9 : f32 to vector<1x256xf32>
    %34 = arith.addf %32, %33 : vector<1x256xf32>
    %35 = math.log %34 : vector<1x256xf32>
    %cst_10 = arith.constant 1.000000e+00 : f32
    %36 = vector.broadcast %cst_10 : f32 to vector<1x256xf32>
    %37 = arith.subf %36, %34 : vector<1x256xf32>
    %38 = arith.mulf %37, %37 : vector<1x256xf32>
    %cst_11 = arith.constant 0.000000e+00 : f32
    %39 = vector.broadcast %cst_11 : f32 to vector<1x256xf32>
    %40 = arith.subf %39, %38 : vector<1x256xf32>
    %41 = arith.mulf %40, %35 : vector<1x256xf32>
    %c0_12 = arith.constant 0 : index
    %c0_13 = arith.constant 0 : index
    %42 = vector.load %arg4[%c0_12, %c0_13] : memref<4x1xf32, #tpu.memory_space<vmem>>, vector<4x1xf32>
    %43 = vector.broadcast %42 : vector<4x1xf32> to vector<4x256xf32>
    %44 = arith.mulf %26, %43 : vector<4x256xf32>
    %cst_14 = arith.constant dense<0.000000e+00> : vector<256xf32>
    %45 = vector.multi_reduction <add>, %44, %cst_14 [0] : vector<4x256xf32> to vector<256xf32>
    %46 = vector.shape_cast %45 : vector<256xf32> to vector<1x256xf32>
    %cst_15 = arith.constant 0.000000e+00 : f32
    %47 = vector.broadcast %cst_15 : f32 to vector<1x256xf32>
    %48 = arith.select %9, %41, %47 : vector<1x256xi1>, vector<1x256xf32>
    %cst_16 = arith.constant 0.000000e+00 : f32
    %49 = vector.broadcast %cst_16 : f32 to vector<1x256xf32>
    %50 = arith.select %9, %46, %49 : vector<1x256xi1>, vector<1x256xf32>
    %51 = vector.shape_cast %48 : vector<1x256xf32> to vector<1x1x256xf32>
    %cst_17 = arith.constant dense<0.000000e+00> : vector<1xf32>
    %52 = vector.multi_reduction <add>, %51, %cst_17 [1, 2] : vector<1x1x256xf32> to vector<1xf32>
    %53 = vector.shape_cast %52 : vector<1xf32> to vector<1x1x1xf32>
    %54 = vector.extract %53[0, 0, 0] : f32 from vector<1x1x1xf32>
    %55 = vector.shape_cast %50 : vector<1x256xf32> to vector<1x1x256xf32>
    %cst_18 = arith.constant dense<0.000000e+00> : vector<1xf32>
    %56 = vector.multi_reduction <add>, %55, %cst_18 [1, 2] : vector<1x1x256xf32> to vector<1xf32>
    %57 = vector.shape_cast %56 : vector<1xf32> to vector<1x1x1xf32>
    %58 = vector.extract %57[0, 0, 0] : f32 from vector<1x1x1xf32>
    %59 = tpu.iota {dimensions = array<i32: 0>} : vector<2x128xi32>
    %c0_i32 = arith.constant 0 : i32
    %60 = vector.broadcast %c0_i32 : i32 to vector<2x128xi32>
    %61 = arith.cmpi eq, %59, %60 : vector<2x128xi32>
    %62 = vector.broadcast %54 : f32 to vector<2x128xf32>
    %63 = vector.broadcast %58 : f32 to vector<2x128xf32>
    %64 = arith.select %61, %62, %63 : vector<2x128xi1>, vector<2x128xf32>
    %65 = vector.shape_cast %64 : vector<2x128xf32> to vector<1x1x2x128xf32>
    %c0_19 = arith.constant 0 : index
    %c0_20 = arith.constant 0 : index
    %c0_21 = arith.constant 0 : index
    %c0_22 = arith.constant 0 : index
    %66 = vector.load %arg5[%c0_19, %c0_20, %c0_21, %c0_22] : memref<1x1x2x128xf32, #tpu.memory_space<vmem>>, vector<1x1x2x128xf32>
    tpu.vector_store %arg5[%c0_19, %c0_20, %c0_21, %c0_22], %65 {strides = array<i32>} : memref<1x1x2x128xf32, #tpu.memory_space<vmem>>, vector<1x1x2x128xf32>,
    return
  }
  func.func @transform_0(%arg0: i32, %arg1: i32) -> (i32, i32, i32) {
    %c0_i32 = arith.constant 0 : i32
    %c0_i32_0 = arith.constant 0 : i32
    return %arg0, %c0_i32, %arg1 : i32, i32, i32
  }
  func.func @transform_1(%arg0: i32, %arg1: i32) -> (i32, i32, i32) {
    %c0_i32 = arith.constant 0 : i32
    %c0_i32_0 = arith.constant 0 : i32
    return %arg0, %c0_i32, %arg1 : i32, i32, i32
  }
  func.func @transform_2(%arg0: i32, %arg1: i32) -> (i32, i32) {
    %c0_i32 = arith.constant 0 : i32
    %c0_i32_0 = arith.constant 0 : i32
    %c0_i32_1 = arith.constant 0 : i32
    return %c0_i32, %c0_i32_0 : i32, i32
  }
  func.func @transform_3(%arg0: i32, %arg1: i32) -> (i32, i32, i32, i32) {
    %c0_i32 = arith.constant 0 : i32
    %c0_i32_0 = arith.constant 0 : i32
    %c0_i32_1 = arith.constant 0 : i32
    return %arg0, %arg1, %c0_i32, %c0_i32_0 : i32, i32, i32, i32
  }
}

</mosaic_0001>

<bundles_post_ra>
// kernel: tpu_custom_call.1
= control target key start
LH: loop header
LB: loop body
LE: loop exit
PB: predicated region body
PF: predicated region fallthrough
CT: control target
= control target key end

     0   :  { %8 = vsyncpa [#allocation3], 0  ;;  %s934_s0 = inlined_call_operand.hbm [shape: f32[2,4,256], index: 0, kind: input, shape index: {}]   ;;  %s935_s1 = inlined_call_operand.vmem [shape: s32[2,1,256], index: 1, kind: input, shape index: {}]   ;;  %s936_s2 = inlined_call_operand.vmem [shape: f32[4,1], index: 2, kind: input, shape index: {}]   ;;  %s937_s3 = inlined_call_operand.hbm [shape: f32[2,1,2,128], index: 3, kind: output, shape index: {}]  }
   0x1   :  { %10 = vsyncpa [#allocation3 + $0x1], 0 }
   0x2   :  { %11 = vsyncpa [#allocation4], 0 }
   0x3   :  { %13 = vsyncpa [#allocation4 + $0x1], 0  ;;  %s758_s12 = smov 0   ;;  %s760_s13 = smov 0  }
   0x4   :  { %s762_s14 = smov 0   ;;  %s764_s15 = smov 0  }
   0x5   :  { %s766_s16 = smov 0   ;;  %s768_s17 = smov 0  }
   0x6 LB: > { %s520_s18 = sadd.s32 4294967295, %s732_s17   ;;  %s521_s19 = sadd.s32 4294967294, %s732_s17   ;;  %s732_s17 = sphi %s768_s17, %s19_s17   ;;  %s728_s16 = sphi %s766_s16, %s949_s16   ;;  %s724_s15 = sphi %s764_s15, %s948_s15   ;;  %s720_s14 = sphi %s762_s14, %s947_s14   ;;  %s716_s13 = sphi %s760_s13, %s946_s13   ;;  %s712_s12 = sphi %s758_s12, %s945_s12  }
   0x7   : > { %s31_s20 = sadd.s32 1, %s728_s16  ;;  %s40_s21 = sadd.s32 1, %s720_s14 }
   0x8   : > { %p33_p0 = scmp.ge.s32.totalorder %s31_s20, 2  ;;  %p47_p1 = scmp.ne.s32.totalorder %s720_s14, %s716_s13 }
   0x9   : > { %p48_p2 = scmp.eq.s32.totalorder %s732_s17, 0  ;;  %p53_p3 = scmp.ne.s32.totalorder %s716_s13, %s712_s12 }
   0xa   : > { %s951_s20 = smov (%p33_p0, %s31_s20), 0  ;;  %p54_p5 = scmp.eq.s32.totalorder %s520_s18, 0 }
   0xb   : > { %p799_p4 = por %p48_p2, %p47_p1  ;;  %s35_s23 = ssub.s32 %s728_s16, %s951_s20 }
   0xc   : > { %p128_p6 = scmp.eq.s32.totalorder %s520_s18, 1  ;;  %p38_p7 = scmp.eq.s32.totalorder %s35_s23, 0 }
   0xd   : > { %p805_p8 = por %p54_p5, %p53_p3  ;;  %p134_p10 = scmp.eq.s32.totalorder %s521_s19, 1 }
   0xe   : > { %p809_p9 = por %p128_p6, %p47_p1  ;;  %p554_p13 = scmp.lt.s32.totalorder %s732_s17, 2 }
   0xf   : > { %s814_s26 = scalar_select %p38_p7, %s720_s14, %s40_s21  }
  0x10   : > { %p816_p11 = por %p134_p10, %p53_p3  ;;  %s157_s28 = sand.u32 1, %s720_s14  }
  0x11   : > { %s524_s29 = sshll.u32 %s157_s28, 3  ;;  %s537_s30 = sshll.u32 %s728_s16, 7 }
  0x12   : > { %s941_s27 = scalar_select %p816_p11, 1, 0 }
  0x13   : > { %s169_s6 = scalar_lea.hbm %s934_s0, %s537_s30  ;;  %s161_s7 = scalar_lea.vmem [#allocation2], %s524_s29 }
  0x14   : > { %s171_s8 = sshll.u32 %s161_s7, 4  ;;  %p829_p0 = pnand %p554_p13, %p799_p4  ;;  %s172_s8 = int_to_ptr.vmem [resolvable:$true] %s171_s8 }
  0x15   : > { %p527_p1 = scmp.ge.s32.totalorder %s732_s17, 1  ;;  %p188_p2 = scmp.lt.s32.totalorder %s732_s17, 3 }
  0x16   : > { %s158_s10 = scalar_lea.sflag [#allocation3], %s157_s28  ;;  %p626_p3 = pneg %p829_p0 }
  0x17   : > { %s637_s11 = scalar_lea.vmem %s172_s8, 128  ;;  %s734_s18 = smov [#allocation2]  }
  0x18   : > { %p638_p5 = scmp.ne.s32.totalorder %s172_s8, %s637_s11  ;;  %s642_s19 = sshll.u32 %s734_s18, 4  ;;  %s643_s19 = int_to_ptr.vmem [resolvable:$false] %s642_s19 }
  0x19   : > { %s644_s21 = scalar_lea.vmem %s643_s19, 256  ;;  %p645_p10 = scmp.lt.s32.totalorder %s172_s8, %s643_s19 }
  0x1a   : > { %p640_p6 = pnand %p638_p5, %p626_p3  ;;  %p646_p12 = scmp.lt.s32.totalorder %s644_s21, %s637_s11 }
  0x1c   : > { %p641_p7 = pneg %p640_p6  ;;  %p647_p4 = por %p646_p12, %p645_p10 }
  0x1e   : > { %p648_p13 = pnand %p647_p4, %p641_p7 }
  0x20   : > { %651 = shalt.err (!%p648_p13)
}
  0x21   : > { %549 = dma.hbm_to_vmem [thread:$0]  (!%p829_p0), %s169_s6, 128, %s172_s8, %s158_s10  }
  0x22   : > { %p189_p11 = pnand %p527_p1, %p188_p2 }
  0x23   : > { %s844_s22 = sand.u32 (!%p189_p11), 1, %s716_s13  }
  0x24   : > { %192 = sbr.rel (%p189_p11) target bundleno = 401 (0x191), region = 32  ;;  %s528_s23 = sshll.u32 (!%p189_p11), %s844_s22, 3 }
  0x25   : > { %s195_s28 = scalar_lea.sflag (!%p189_p11), [#allocation3], %s844_s22  ;;  %s198_s29 = scalar_lea.vmem (!%p189_p11), [#allocation2], %s528_s23 }
  0x29   : > { %703 = dma.done.wait (%p805_p8), %s195_s28, 128  }
  0x2a   : > { %705 = vsyncadd (%p805_p8), %s195_s28, 4294967168  ;;  %v735_v0 = vmov 0   ;;  %vm259_vm0 = vcmask 1043456   ;;  %p231_p11 = scmp.lt.s32.totalorder %s724_s15, 1  ;;  %v352_v1 = vld [vmem:[%s936_s2] sm:$0xf]  ;;  %v298_v7 = vlaneseq }
  0x2b   : > { %606 = vset.pattern.permute.xlu0 %v735_v0  ;;  %v239_v2 = vld [vmem:[%s198_s29] sm:$0xff]  ;;  %v736_v29 = vmov 0.0   ;;  %vm378_vm3 = vcmask 1040384   ;;  %s529_s9 = sshll.u32 %s844_s22, 1  ;;  %s534_s10 = sshll.u32 %s724_s15, 5 }
  0x2c   : > { %355 = vperm.xlu0 %606, %v352_v1   ;;  %v255_v3 = vcombine.high %v239_v2, %v239_v2  ;;  %v260_v4 = vsel %vm259_vm0, %v239_v2, -inf  ;;  %s232_s5 = scalar_select %p231_p11, %s724_s15, 1  ;;  %v859_v12 = vshrl.u32 %v298_v7, 7 }
  0x2d   : > { %v261_v5 = vrot.slane %v260_v4, 4  ;;  %s228_s18 = scalar_lea.vmem [#allocation5], %s529_s9  ;;  %s892_s29 = scalar_lea.hbm %s937_s3, %s534_s10 }
  0x2e   : > { %v267_v6 = vsel %vm259_vm0, %v255_v3, -inf  ;;  %s530_s24 = sshll.u32 %s232_s5, 1  ;;  %v302_v17 = vsub.s32 0, %v859_v12  ;;  %v306_v21 = vsub.s32 1, %v859_v12  ;;  %s423_s19 = sshll.u32 %s228_s18, 4  ;;  %vm403_vm4 = vcmp.eq.s32.totalorder %v859_v12, 0  ;;  %s424_s19 = int_to_ptr.vmem [resolvable:$true] %s423_s19 }
  0x2f   : > { %v262_v8 = vmax.f32 %v260_v4, %v261_v5  ;;  %v268_v9 = vrot.slane %v267_v6, 4  ;;  %s237_s8 = scalar_lea.vmem %s935_s1, %s530_s24  ;;  %s409_s30 = scalar_lea.sflag [#allocation4], %s844_s22 }
  0x30   : > { %v240_v20 = vld [vmem:[%s237_s8] sm:$0x3]  ;;  %s652_s4 = scalar_lea.vmem %s424_s19, 32  ;;  %s737_s15 = smov [#allocation5]  }
  0x31   : > { %v263_v10 = vrot.slane %v262_v8, 2  ;;  %v269_v11 = vmax.f32 %v267_v6, %v268_v9  ;;  %v303_v26 = vrot.slane %v240_v20, %v302_v17  ;;  %v307_v28 = vrot.slane %v240_v20, %v306_v21  ;;  %p653_p8 = scmp.ne.s32.totalorder %s424_s19, %s652_s4  ;;  %s656_s5 = sshll.u32 %s737_s15, 4  ;;  %s657_s5 = int_to_ptr.vmem [resolvable:$false] %s656_s5 }
  0x32   : > { %s658_s24 = scalar_lea.vmem %s657_s5, 64  ;;  %p659_p1 = scmp.lt.s32.totalorder %s424_s19, %s657_s5 }
  0x33   : > { %v264_v13 = vmax.f32 %v262_v8, %v263_v10  ;;  %v270_v14 = vrot.slane %v269_v11, 2  ;;  %vm308_vm1 = vcmp.eq.s32.totalorder %v859_v12, %v303_v26  ;;  %vm309_vm2 = vcmp.eq.s32.totalorder %v859_v12, %v307_v28  ;;  %p654_p12 = pnand %p653_p8, %p809_p9  ;;  %p660_p2 = scmp.lt.s32.totalorder %s658_s24, %s652_s4 }
  0x34   : > { %v868_v30 = vsel %vm308_vm1, 1.0, %v736_v29  ;;  %v870_v31 = vsel %vm309_vm2, 1.0, %v736_v29 }
  0x35   : > { %v265_v15 = vrot.slane %v264_v13, 1  ;;  %v271_v16 = vmax.f32 %v269_v11, %v270_v14  ;;  %v314_v32 = vmul.f32 %v868_v30, %v239_v2  ;;  %v315_v33 = vmul.f32 %v870_v31, %v255_v3  ;;  %p655_p0 = pneg %p654_p12  ;;  %p661_p3 = por %p660_p2, %p659_p1 }
  0x37   : > { %v266_v18 = vmax.f32 %v264_v13, %v265_v15  ;;  %v272_v19 = vrot.slane %v271_v16, 1  ;;  %v316_v34 = vsel %vm259_vm0, %v314_v32, 0.0  ;;  %v323_v36 = vsel %vm259_vm0, %v315_v33, 0.0  ;;  %p662_p5 = pnand %p661_p3, %p655_p0 }
  0x38   : > { %v317_v39 = vrot.slane %v316_v34, 4  ;;  %v324_v42 = vrot.slane %v323_v36, 4 }
  0x39   : > { %v273_v22 = vmax.f32 %v271_v16, %v272_v19  ;;  %v274_v23 = vsub.f32 %v239_v2, %v266_v18 }
  0x3a   : > { %v318_v45 = vadd.f32 %v317_v39, %v316_v34  ;;  %v325_v48 = vadd.f32 %v324_v42, %v323_v36 }
  0x3b   : > { %v275_v24 = vsub.f32 %v255_v3, %v273_v22  ;;  %v276_v25 = vmul.f32 1.442695, %v274_v23 }
  0x3c   : > { %v319_v51 = vrot.slane %v318_v45, 2  ;;  %v326_v54 = vrot.slane %v325_v48, 2 }
  0x3d   : > { %608 = vpow2.f32 %v276_v25  ;;  %v278_v27 = vmul.f32 1.442695, %v275_v24 }
  0x3e   : > { %v320_v57 = vadd.f32 %v319_v51, %v318_v45  ;;  %v327_v59 = vadd.f32 %v326_v54, %v325_v48 }
  0x3f   : > { %610 = vpow2.f32 %v278_v27 }
  0x40   : > { %v321_v60 = vrot.slane %v320_v57, 1  ;;  %v328_v61 = vrot.slane %v327_v59, 1 }
  0x42   : > { %v322_v62 = vadd.f32 %v321_v60, %v320_v57  ;;  %v329_v63 = vadd.f32 %v328_v61, %v327_v59 }
  0x44   : > { %v330_v0 = vsub.f32 %v322_v62, %v266_v18  ;;  %v331_v2 = vsub.f32 %v329_v63, %v273_v22 }
  0x4a   : > { %v609_v35 = vpop.eup %608 }
  0x4b   : > { %v280_v37 = vsel %vm259_vm0, %v609_v35, 0.0 }
  0x4c   : > { %v611_v38 = vpop.eup %610  ;;  %v281_v40 = vrot.slane %v280_v37, 4 }
  0x4d   : > { %v287_v41 = vsel %vm259_vm0, %v611_v38, 0.0 }
  0x4e   : > { %v282_v43 = vadd.f32 %v281_v40, %v280_v37  ;;  %v288_v44 = vrot.slane %v287_v41, 4 }
  0x50   : > { %v283_v46 = vrot.slane %v282_v43, 2  ;;  %v289_v47 = vadd.f32 %v288_v44, %v287_v41 }
  0x52   : > { %v284_v49 = vadd.f32 %v283_v46, %v282_v43  ;;  %v290_v50 = vrot.slane %v289_v47, 2 }
  0x54   : > { %v285_v52 = vrot.slane %v284_v49, 1  ;;  %v291_v53 = vadd.f32 %v290_v50, %v289_v47 }
  0x56   : > { %v286_v55 = vadd.f32 %v285_v52, %v284_v49  ;;  %v292_v56 = vrot.slane %v291_v53, 1 }
  0x58   : > { %v293_v58 = vadd.f32 %v292_v56, %v291_v53  ;;  %612 = vlog2.f32 %v286_v55 }
  0x5a   : > { %614 = vlog2.f32 %v293_v58 }
  0x65   : > { %v613_v1 = vpop.eup %612 }
  0x66   : > { %v295_v3 = vmul.f32 0.6931472, %v613_v1 }
  0x67   : > { %v615_v4 = vpop.eup %614 }
  0x68   : > { %v297_v5 = vmul.f32 0.6931472, %v615_v4  ;;  %v332_v6 = vsub.f32 %v330_v0, %v295_v3 }
  0x6a   : > { %v333_v7 = vsub.f32 %v331_v2, %v297_v5  ;;  %v334_v8 = vmul.f32 1.442695, %v332_v6 }
  0x6c   : > { %616 = vpow2.f32 %v334_v8  ;;  %v336_v9 = vmul.f32 1.442695, %v333_v7 }
  0x6e   : > { %618 = vpow2.f32 %v336_v9 }
  0x79   : > { %v617_v10 = vpop.eup %616 }
  0x7a   : > { %v338_v11 = vadd.f32 1e-10, %v617_v10 }
  0x7b   : > { %v619_v13 = vpop.eup %618 }
  0x7c   : > { %v339_v14 = vadd.f32 1e-10, %v619_v13  ;;  %620 = vlog2.f32 %v338_v11  ;;  %v344_v15 = vsub.f32 1.0, %v338_v11 }
  0x7e   : > { %622 = vlog2.f32 %v339_v14  ;;  %v345_v16 = vsub.f32 1.0, %v339_v14  ;;  %v346_v17 = vmul.f32 %v344_v15, %v344_v15 }
  0x80   : > { %v347_v18 = vmul.f32 %v345_v16, %v345_v16  ;;  %v348_v19 = vsub.f32 0.0, %v346_v17 }
  0x82   : > { %v349_v22 = vsub.f32 0.0, %v347_v18 }
  0x89   : > { %v621_v20 = vpop.eup %620 }
  0x8a   : > { %v341_v21 = vmul.f32 0.6931472, %v621_v20 }
  0x8b   : > { %v623_v23 = vpop.eup %622 }
  0x8c   : > { %v343_v24 = vmul.f32 0.6931472, %v623_v23  ;;  %v350_v25 = vmul.f32 %v348_v19, %v341_v21 }
  0x8e   : > { %v351_v26 = vmul.f32 %v349_v22, %v343_v24  ;;  %v379_v27 = vsel %vm378_vm3, %v350_v25, 0.0 }
  0x90   : > { %v380_v28 = vsel %vm378_vm3, %v351_v26, 0.0 }
  0x91   : > { %v381_v29 = vadd.f32 %v380_v28, %v379_v27 }
  0x93   : > { %382 = vadd.xlane.f32.xlu0 %v381_v29 }
  0xa7   : > { %v356_v32 = vpop.permute.xlu0 %355 }
  0xa8   : > { %v358_v33 = vmul.f32 %v868_v30, %v356_v32  ;;  %v359_v34 = vmul.f32 %v870_v31, %v356_v32 }
  0xaa   : > { %v360_v35 = vsel %vm259_vm0, %v358_v33, 0.0  ;;  %v367_v36 = vsel %vm259_vm0, %v359_v34, 0.0 }
  0xab   : > { %v361_v37 = vrot.slane %v360_v35, 4  ;;  %v368_v38 = vrot.slane %v367_v36, 4 }
  0xad   : > { %v362_v39 = vadd.f32 %v361_v37, %v360_v35  ;;  %v369_v40 = vadd.f32 %v368_v38, %v367_v36 }
  0xaf   : > { %v363_v41 = vrot.slane %v362_v39, 2  ;;  %v370_v42 = vrot.slane %v369_v40, 2 }
  0xb1   : > { %v364_v43 = vadd.f32 %v363_v41, %v362_v39  ;;  %v371_v44 = vadd.f32 %v370_v42, %v369_v40 }
  0xb3   : > { %v365_v45 = vrot.slane %v364_v43, 1  ;;  %v372_v46 = vrot.slane %v371_v44, 1 }
  0xb5   : > { %v366_v47 = vadd.f32 %v365_v45, %v364_v43  ;;  %v373_v48 = vadd.f32 %v372_v46, %v371_v44 }
  0xb7   : > { %v391_v30 = vsel %vm378_vm3, %v366_v47, 0.0  ;;  %v392_v31 = vsel %vm378_vm3, %v373_v48, 0.0 }
  0xb8   : > { %v393_v49 = vadd.f32 %v392_v31, %v391_v30 }
  0xba   : > { %394 = vadd.xlane.f32.xlu1 %v393_v49 }
 0x11c   : > { %v383_v50 = vpop.xlane.xlu0 %382 }
 0x11d   : > { %v384_v51 = vrot.slane %v383_v50, 4 }
 0x11f   : > { %v385_v52 = vadd.f32 %v384_v51, %v383_v50 }
 0x121   : > { %v386_v53 = vrot.slane %v385_v52, 2 }
 0x123   : > { %v387_v54 = vadd.f32 %v386_v53, %v385_v52 }
 0x125   : > { %v388_v55 = vrot.slane %v387_v54, 1 }
 0x127   : > { %v389_v56 = vadd.f32 %v388_v55, %v387_v54 }
 0x129   : > { %538 = vpush %v389_v56 }
 0x143   : > { %v395_v57 = vpop.xlane.xlu1 %394 }
 0x144   : > { %v396_v58 = vrot.slane %v395_v57, 4 }
 0x146   : > { %v397_v59 = vadd.f32 %v396_v58, %v395_v57 }
 0x148   : > { %v398_v60 = vrot.slane %v397_v59, 2 }
 0x14a   : > { %v399_v61 = vadd.f32 %v398_v60, %v397_v59 }
 0x14c   : > { %v400_v62 = vrot.slane %v399_v61, 1 }
 0x14e   : > { %v401_v63 = vadd.f32 %v400_v62, %v399_v61 }
 0x150   : > { %540 = vpush %v401_v63 }
 0x15a   : > { %s539_s11 = spop %538 }
 0x15b   : > { %v404_v0 = vstv %s539_s11 }
 0x181   : > { %s541_s21 = spop %540 }
 0x182   : > { %v405_v1 = vstv %s541_s21 }
 0x183   : > { %v406_v2 = vsel %vm403_vm4, %v404_v0, %v405_v1 }
 0x184   : > { %407 = vst [vmem:[%s228_s18] sm:$0x3] %v406_v2 }
 0x185   : > { %665 = shalt.err (!%p662_p5)
}
 0x186   : > { %s666_s6 = scalar_lea.hbm %s892_s29, 32  ;;  %s670_s8 = scalar_lea.hbm %s937_s3, 64 }
 0x187   : > { %p667_p6 = scmp.ne.s32.totalorder %s892_s29, %s666_s6  ;;  %p671_p4 = scmp.lt.s32.totalorder %s892_s29, %s937_s3 }
 0x188   : > { %p672_p13 = scmp.lt.s32.totalorder %s670_s8, %s666_s6 }
 0x189   : > { %p668_p7 = pnand %p667_p6, %p809_p9 }
 0x18a   : > { %p673_p11 = por %p672_p13, %p671_p4 }
 0x18b   : > { %p669_p10 = pneg %p668_p7 }
 0x18d   : > { %p674_p8 = pnand %p673_p11, %p669_p10 }
 0x18f   : > { %677 = shalt.err (!%p674_p8)
}
 0x190   : > { %544 = dma.vmem_to_hbm [thread:$0]  (%p809_p9), %s424_s19, 32, %s892_s29, %s409_s30  }
 0x191 PF: > { %s435_s11 = sand.u32 1, %s712_s12   ;;  %p943_p12 = scmp.ne.s32.totalorder %s941_s27, 0 }
 0x192   : > { %p944_p0 = scmp.ge.s32.totalorder %s732_s17, 2  ;;  %s436_s18 = scalar_lea.sflag [#allocation4], %s435_s11 }
 0x194   : > { %p551_p1 = pnand %p944_p0, %p943_p12 }
 0x196   : > { %p552_p2 = pneg %p551_p1 }
 0x198   : > { %707 = dma.done.wait (%p552_p2), %s436_s18, 32  }
 0x199   : > { %709 = vsyncadd (%p552_p2), %s436_s18, 4294967264  ;;  %s19_s17 = sadd.s32 1, %s732_s17   ;;  %s945_s12 = smov %s716_s13 }
 0x19a   : > { %p16_p3 = scmp.ge.s32.totalorder %s19_s17, 4   ;;  %s946_s13 = smov %s720_s14 }
 0x19b   : > { %s947_s14 = smov %s814_s26  ;;  %s948_s15 = smov %s728_s16 }
 0x19c   : > { %s949_s16 = smov %s951_s20  ;;  %18 = sbr.rel (!%p16_p3) target bundleno = 6 (0x6), region = 80 }
 0x1a1   :  { %441 = vsyncpa [#allocation3], 1 }
 0x1a2   :  { %443 = vsyncpa [#allocation3 + $0x1], 1 }
 0x1a3   :  { %444 = vsyncpa [#allocation4], 1 }
 0x1a4   :  { %446 = vsyncpa [#allocation4 + $0x1], 1 }

</bundles_post_ra>
